<compile_context>
chip_gen: v5e
topology: v5e:2x2
jax: 0.10.0
libtpu: 0.0.40
codegen_flags: <defaults>
</compile_context>

<pallas_src>
import functools

import jax
import jax.numpy as jnp
from jax import lax
from jax.experimental import pallas as pl
from jax.experimental.pallas import tpu as pltpu


def _cdiv(a, b):
    return -(-a // b)


def _round_up(a, b):
    return _cdiv(a, b) * b


# ----------------------------------------------------------------------------
# Kernel 1: transforms.Normalize((0.5,), (0.5,))  ->  (x - 0.5) / 0.5
#
# The batch is flattened, zero-padded to a multiple of 1024 elements, and
# viewed as a (rows, 1024) slab so every load/store is full-lane (1024 is a
# multiple of 128).  Tiles of up to ~4 MiB amortize the ~0.35 us per-step
# pipeline overhead; (in + out) x 2 double-buffers stay <= 16 MiB, safely
# under the scoped-VMEM limits of v5e/v6e/v7x.
# ----------------------------------------------------------------------------
_NORM_LANE = 1024  # last-dim width of the working slab (multiple of 128)


def _normalize_kernel(x_ref, o_ref):
    o_ref[...] = ((x_ref[...] - 0.5) * 2.0).astype(o_ref.dtype)


def _normalize_tile_rows(rows, lane, itemsize, tile_budget_bytes):
    """Tile rows: either the whole (small) slab, or the largest multiple of 8
    rows whose tile fits the budget."""
    max_rows = max(1, tile_budget_bytes // (lane * itemsize))
    if rows <= max_rows:
        return rows  # single resident block (tiny inputs) -- block == full dim
    return max(8, (max_rows // 8) * 8)


def normalize_images(x_nchw, out_dtype=None, tile_budget_bytes=4 * 1024 * 1024):
    """x_nchw: f32 [B, C, H, W] in [0, 1] (as produced by ToTensor).

    Returns (x - 0.5) / 0.5 with the same shape (optionally cast to out_dtype,
    e.g. bf16 to halve the store traffic when the forward consumes bf16).
    """
    orig_shape = x_nchw.shape
    out_dtype = x_nchw.dtype if out_dtype is None else out_dtype

    total = 1
    for d in orig_shape:
        total *= d
    flat = x_nchw.reshape(total)

    rows = _cdiv(total, _NORM_LANE)
    tr = _normalize_tile_rows(rows, _NORM_LANE, flat.dtype.itemsize,
                              tile_budget_bytes)
    rows_pad = _round_up(rows, tr)
    total_pad = rows_pad * _NORM_LANE
    if total_pad != total:
        flat = jnp.pad(flat, (0, total_pad - total))
    x2d = flat.reshape(rows_pad, _NORM_LANE)

    out2d = pl.pallas_call(
        _normalize_kernel,
        out_shape=jax.ShapeDtypeStruct((rows_pad, _NORM_LANE), out_dtype),
        grid=(rows_pad // tr,),
        in_specs=[pl.BlockSpec((tr, _NORM_LANE), lambda i: (i, 0))],
        out_specs=pl.BlockSpec((tr, _NORM_LANE), lambda i: (i, 0)),
        compiler_params=pltpu.CompilerParams(
            # independent tiles -> sharded across both TensorCores on v7x
            dimension_semantics=("parallel",),
            vmem_limit_bytes=32 * 1024 * 1024,
        ),
    )(x2d)
    # TODO(synk): in a concrete subclass, fuse this normalize into the first
    #             forward matmul (allow_input_fusion) to skip an HBM round-trip.
    return out2d.reshape(total_pad)[:total].reshape(orig_shape)


# ----------------------------------------------------------------------------
# Kernel 2: nn.CrossEntropyLoss (mean reduction) + torch.max(outputs, 1)
#           + (predicted == labels).sum()
#
# Lane-dense-N layout: logits arrive as (C, N) blocked (C, TN); labels as
# (1, N) blocked (1, TN).  All class reductions run over the sublane axis so
# (C=10, TN) tiles occupy 2 x TN/128 vregs instead of 16 mostly-masked ones.
# The scalar loss / correct outputs are resident (1, 1) accumulators
# (initialized under pl.when at step 0, scaled by 1/N at the last step); the
# reduction axis is therefore "arbitrary".  Predictions are emitted directly
# as a lane-dense (1, TN) row.  N is padded to a multiple of TN in the wrapper
# and the padded tail is masked with a global-column-index validity mask.
# ----------------------------------------------------------------------------
def _ce_pred_kernel(logits_ref, labels_ref, pred_ref, loss_ref, correct_ref,
                    *, n_total, inv_total_n):
    i = pl.program_id(0)

    @pl.when(i == 0)
    def _():
        loss_ref[...] = jnp.zeros_like(loss_ref)
        correct_ref[...] = jnp.zeros_like(correct_ref)

    logits = logits_ref[...].astype(jnp.float32)   # (C, TN)
    labels = labels_ref[...]                       # (1, TN) int32
    c, tn = logits.shape

    # Validity mask for the zero-padded tail columns of the last tile.
    col = lax.broadcasted_iota(jnp.int32, (1, tn), 1) + i * tn   # global index
    valid = col < n_total                                        # (1, TN)

    # One sublane-axis max, reused for both log-sum-exp and the argmax.
    m = jnp.max(logits, axis=0, keepdims=True)                          # (1,TN)
    shifted = logits - m                                                # (C,TN)
    log_z = jnp.log(jnp.sum(jnp.exp(shifted), axis=0, keepdims=True))   # (1,TN)

    row = lax.broadcasted_iota(jnp.int32, (c, tn), 0)                   # (C,TN)
    onehot = (row == labels).astype(jnp.float32)                        # (C,TN)
    picked = jnp.sum(onehot * shifted, axis=0, keepdims=True)           # (1,TN)

    # Raw NLL sum for this tile (the +m terms cancel); padded columns masked.
    nll = jnp.where(valid, log_z - picked, 0.0)
    loss_ref[...] += jnp.sum(nll, axis=(0, 1), keepdims=True)

    # First-max argmax (torch.max semantics), reusing m via shifted == 0.
    # (logits were cast to f32 BEFORE computing m, so the equality is exact.)
    is_max = shifted == 0.0
    pred = jnp.min(jnp.where(is_max, row, c), axis=0, keepdims=True)    # (1,TN)
    pred_ref[...] = pred

    hits = jnp.logical_and(valid, pred == labels)
    correct_ref[...] += jnp.sum(hits.astype(jnp.int32), axis=(0, 1),
                                keepdims=True)

    @pl.when(i == pl.num_programs(0) - 1)
    def _():
        loss_ref[...] = loss_ref[...] * inv_total_n   # single final 1/N scale


def cross_entropy_and_predict(logits, labels, tile_cols=4096):
    """logits: f32 [N, C]; labels: int [N].

    Returns (mean_ce_loss scalar, predicted [N] int32, num_correct scalar
    int32), mirroring the compute inside BaseModel.accuracy()/train_model().
    """
    n, c = logits.shape
    # Lane-dense layout: classes on sublanes, samples on lanes.  (A concrete
    # subclass' last layer could emit (C, N) directly and skip this transpose.)
    logits_t = jnp.transpose(logits).astype(jnp.float32)      # (C, N)
    labels2d = labels.astype(jnp.int32).reshape(1, n)          # (1, N)

    tn = min(tile_cols, _round_up(n, 128))
    tn = _round_up(tn, 128)                  # lane-dense block width
    n_pad = _round_up(n, tn)
    if n_pad != n:
        logits_t = jnp.pad(logits_t, ((0, 0), (0, n_pad - n)))
        labels2d = jnp.pad(labels2d, ((0, 0), (0, n_pad - n)))

    kernel = functools.partial(_ce_pred_kernel, n_total=n, inv_total_n=1.0 / n)
    pred, loss, correct = pl.pallas_call(
        kernel,
        out_shape=(
            jax.ShapeDtypeStruct((1, n_pad), jnp.int32),    # lane-dense preds
            jax.ShapeDtypeStruct((1, 1), jnp.float32),      # mean CE loss
            jax.ShapeDtypeStruct((1, 1), jnp.int32),        # number correct
        ),
        grid=(n_pad // tn,),
        in_specs=[
            pl.BlockSpec((c, tn), lambda i: (0, i)),
            pl.BlockSpec((1, tn), lambda i: (0, i)),
        ],
        out_specs=(
            pl.BlockSpec((1, tn), lambda i: (0, i)),
            pl.BlockSpec((1, 1), lambda i: (0, 0)),   # resident accumulator
            pl.BlockSpec((1, 1), lambda i: (0, 0)),   # resident accumulator
        ),
        compiler_params=pltpu.CompilerParams(
            # loss/correct carry across tiles -> this axis must stay sequential
            dimension_semantics=("arbitrary",),
            vmem_limit_bytes=32 * 1024 * 1024,
        ),
    )(logits_t, labels2d)
    return loss[0, 0], pred[0, :n], correct[0, 0]


if __name__ == "__main__":
    key = jax.random.PRNGKey(0)
    k_img, k_logit, k_lab = jax.random.split(key, 3)

    # images: NCHW, single channel, 28x28 (the module's default input_size)
    images = jax.random.uniform(k_img, (2, 1, 28, 28), dtype=jnp.float32)
    normed = normalize_images(images)
    jax.block_until_ready(normed)
    ref_normed = (images - 0.5) / 0.5
    assert jnp.allclose(normed, ref_normed, atol=1e-6), "normalize mismatch"

    # synthetic logits / labels for the criterion + predict kernel
    # (a concrete subclass would produce these via its own forward).
    # N=300 with tile_cols=128 exercises the multi-tile grid, the resident
    # accumulators, and the masked ragged tail (300 -> padded to 384).
    n, num_classes = 300, 10
    logits = jax.random.normal(k_logit, (n, num_classes), dtype=jnp.float32)
    labels = jax.random.randint(k_lab, (n,), 0, num_classes, dtype=jnp.int32)

    loss, pred, correct = cross_entropy_and_predict(logits, labels,
                                                    tile_cols=128)
    jax.block_until_ready((loss, pred, correct))

    # pure-JAX reference check
    logp = jax.nn.log_softmax(logits, axis=1)
    ref_loss = -jnp.mean(logp[jnp.arange(n), labels])
    ref_pred = jnp.argmax(logits, axis=1).astype(jnp.int32)
    ref_correct = jnp.sum((ref_pred == labels).astype(jnp.int32))
    assert jnp.allclose(loss, ref_loss, atol=1e-4), (loss, ref_loss)
    assert jnp.array_equal(pred, ref_pred), (pred, ref_pred)
    assert int(correct) == int(ref_correct), (correct, ref_correct)

    print("KERNEL_OK")
</pallas_src>

<mosaic_0001>
module attributes {stable_mosaic.version = 11 : i64} {
  func.func @_normalize_kernel(%arg0: i32, %arg1: memref<2x1024xf32, #tpu.memory_space<vmem>>, %arg2: memref<2x1024xf32, #tpu.memory_space<vmem>>) attributes {dimension_semantics = [#tpu.dimension_semantics<parallel>], iteration_bounds = array<i64: 1>, scalar_prefetch = 0 : i64, scratch_operands = 0 : i64, tpu.core_type = #tpu.core_type<tc>, window_params = [{transform_indices = @transform_0, window_bounds = array<i64: 2, 1024>}, {transform_indices = @transform_1, window_bounds = array<i64: 2, 1024>}]} {
    %c0 = arith.constant 0 : index
    %c0_0 = arith.constant 0 : index
    %0 = vector.load %arg1[%c0, %c0_0] : memref<2x1024xf32, #tpu.memory_space<vmem>>, vector<2x1024xf32>
    %cst = arith.constant 5.000000e-01 : f32
    %1 = vector.broadcast %cst : f32 to vector<2x1024xf32>
    %2 = arith.subf %0, %1 : vector<2x1024xf32>
    %cst_1 = arith.constant 2.000000e+00 : f32
    %3 = vector.broadcast %cst_1 : f32 to vector<2x1024xf32>
    %4 = arith.mulf %2, %3 : vector<2x1024xf32>
    %c0_2 = arith.constant 0 : index
    %c0_3 = arith.constant 0 : index
    %5 = vector.load %arg2[%c0_2, %c0_3] : memref<2x1024xf32, #tpu.memory_space<vmem>>, vector<2x1024xf32>
    tpu.vector_store %arg2[%c0_2, %c0_3], %4 {strides = array<i32>} : memref<2x1024xf32, #tpu.memory_space<vmem>>, vector<2x1024xf32>,
    return
  }
  func.func @transform_0(%arg0: i32) -> (i32, i32) {
    %c0_i32 = arith.constant 0 : i32
    %c0_i32_0 = arith.constant 0 : i32
    return %arg0, %c0_i32 : i32, i32
  }
  func.func @transform_1(%arg0: i32) -> (i32, i32) {
    %c0_i32 = arith.constant 0 : i32
    %c0_i32_0 = arith.constant 0 : i32
    return %arg0, %c0_i32 : i32, i32
  }
}

</mosaic_0001>

<bundles_post_ra>
// kernel: tpu_custom_call.1
= control target key start
LH: loop header
LB: loop body
LE: loop exit
PB: predicated region body
PF: predicated region fallthrough
CT: control target
= control target key end

     0   :  { %6 = vsyncpa [#allocation3], 0  ;;  %s122_s0 = inlined_call_operand.hbm [shape: f32[2,1024], index: 0, kind: input, shape index: {}]   ;;  %s123_s1 = inlined_call_operand.hbm [shape: f32[2,1024], index: 1, kind: output, shape index: {}]  }
   0x1   :  { %7 = vsyncpa [#allocation4], 0  ;;  %s13_s8 = sshll.u32 %s122_s0, 4  ;;  %s104_s9 = smov [#allocation2]   ;;  %s14_s8 = int_to_ptr.hbm [resolvable:$true] %s13_s8 }
   0x2   :  { %s15_s10 = sshll.u32 %s104_s9, 4  ;;  %s16_s10 = int_to_ptr.vmem [resolvable:$true] %s15_s10 }
   0x3   :  { %18 = dma.hbm_to_vmem [thread:$0]  %s14_s8, 256, %s16_s10, [#allocation3]  }
   0x4   :  { %100 = dma.done.wait [#allocation3], 256  }
   0x5   :  { %101 = vsyncadd [#allocation3], 4294967040  ;;  %v23_v0 = vld [vmem:[#allocation2] sm:$0xff]  ;;  %v24_v1 = vld [vmem:[#allocation2 + $0x8] sm:$0xff]  ;;  %s105_s11 = smov [#allocation5]   ;;  %s38_s15 = sshll.u32 %s123_s1, 4  ;;  %s39_s15 = int_to_ptr.hbm [resolvable:$true] %s38_s15 }
   0x6   :  { %v48_v2 = vadd.f32 -0.5, %v23_v0  ;;  %v49_v3 = vadd.f32 -0.5, %v24_v1  ;;  %s36_s12 = sshll.u32 %s105_s11, 4  ;;  %s37_s12 = int_to_ptr.vmem [resolvable:$true] %s36_s12 }
   0x8   :  { %v27_v4 = vmul.f32 2.0, %v48_v2  ;;  %v28_v5 = vmul.f32 2.0, %v49_v3 }
   0xa   :  { %29 = vst [vmem:[#allocation5] sm:$0xff] %v27_v4 }
   0xb   :  { %30 = vst [vmem:[#allocation5 + $0x8] sm:$0xff] %v28_v5 }
   0xc   :  { %41 = dma.vmem_to_hbm [thread:$0]  %s37_s12, 256, %s39_s15, [#allocation4]  }
   0xd   :  { %102 = dma.done.wait [#allocation4], 256  }
   0xe   :  { %103 = vsyncadd [#allocation4], 4294967040 }
   0xf   :  { %46 = vsyncpa [#allocation3], 1 }
  0x10   :  { %47 = vsyncpa [#allocation4], 1 }

</bundles_post_ra>
